<compile_context>
chip_gen: v7x
topology: tpu7x:2x2x1
jax: 0.10.0
libtpu: 0.0.40
codegen_flags: <defaults>
</compile_context>

<pallas_src>
import jax
import jax.numpy as jnp
from jax.experimental import pallas as pl
from jax.experimental.pallas import tpu as pltpu


def composed_kernel(bias_ref, x_ref, a_ref, b_ref, ret_ref):
    # bias_ref: SMEM (1,) scalar parameter (scalar path, no per-step DMA)
    # x_ref / a_ref / b_ref / ret_ref: VMEM tiles of shape (block_rows, lanes)
    x = x_ref[...]
    a = jnp.sin(x)                       # a = lowerable(x)

    # b = sin(a) with a in [-1, 1]: degree-9 odd polynomial (Taylor/minimax),
    # |error| < 3e-8 on [-1, 1] -> cheaper than a range-reducing sin and
    # numerically indistinguishable at the 1e-6 tolerance.
    a2 = a * a
    p = jnp.float32(2.7557319e-06)                  #  1/9!
    p = p * a2 + jnp.float32(-1.9841270e-04)        # -1/7!
    p = p * a2 + jnp.float32(8.3333333e-03)         #  1/5!
    p = p * a2 + jnp.float32(-1.6666667e-01)        # -1/3!
    b = a + a * a2 * p                              # leading term kept exact

    bias = bias_ref[0]
    a_ref[...] = a
    b_ref[...] = b
    ret_ref[...] = (a + b) + bias        # non_lowerable(a, b)


_MAX_BLOCK_BYTES = 2 * 1024 * 1024       # ~2 MiB per buffer


def _composed_2d(x2d, bias, rows, lanes):
    dtype = x2d.dtype
    elem = x2d.dtype.itemsize
    max_br = max(8, ((_MAX_BLOCK_BYTES // (lanes * elem)) // 8) * 8)

    if rows <= max_br:
        # Whole array fits in one block: grid=(1,), block equals full extent
        # (legal even when rows is not a multiple of 8).
        br = rows
    else:
        # At least 8 grid steps so both v7x TensorCores get >=4 pipelined
        # steps each; cap each buffer at ~2 MiB.  Edge block (if rows % br)
        # is handled by Pallas' masked partial writeback — no wrapper pad.
        br = min(max_br, pl.cdiv(rows, 8))
        br = max(8, (br // 8) * 8)

    grid = (pl.cdiv(rows, br),)
    tile = pl.BlockSpec((br, lanes), lambda i: (i, 0))
    out_shape = jax.ShapeDtypeStruct((rows, lanes), dtype)

    return pl.pallas_call(
        composed_kernel,
        out_shape=(out_shape, out_shape, out_shape),
        grid_spec=pltpu.PrefetchScalarGridSpec(
            num_scalar_prefetch=0,
            grid=grid,
            in_specs=[
                pl.BlockSpec(memory_space=pltpu.MemorySpace.SMEM),  # bias
                tile,                                               # x
            ],
            out_specs=[tile, tile, tile],
        ),
        compiler_params=pltpu.CompilerParams(
            dimension_semantics=("parallel",),
            vmem_limit_bytes=40 * 1024 * 1024,
        ),
    )(bias, x2d)


@jax.jit
def composed_module(x, bias):
    """x: float32 array (any shape, e.g. NCHW). bias: float32 (1,) array.

    Returns (a, b, ret) with the same shape as x.
    """
    orig_shape = x.shape
    total = x.size

    # Pick a lane width that divides the flattened size -> no pad / no slice.
    lanes = None
    for cand in (512, 256, 128):
        if total % cand == 0:
            lanes = cand
            break

    if lanes is not None:
        rows = total // lanes
        x2d = x.reshape(rows, lanes)      # bitcast under jit, no copy
        a, b, ret = _composed_2d(x2d, bias, rows, lanes)
        return (a.reshape(orig_shape),
                b.reshape(orig_shape),
                ret.reshape(orig_shape))

    # Ragged fallback (flattened size not a multiple of 128) — rare for
    # conv-shaped inputs; never hit by the test shape below.
    # TODO(synk): mask the tail in-kernel instead of padding for this case.
    lanes = 128
    rows = pl.cdiv(total, lanes)
    flat = jnp.pad(x.reshape(-1), (0, rows * lanes - total))
    a, b, ret = _composed_2d(flat.reshape(rows, lanes), bias, rows, lanes)

    def unflatten(y):
        return y.reshape(-1)[:total].reshape(orig_shape)

    return unflatten(a), unflatten(b), unflatten(ret)


if __name__ == "__main__":
    key = jax.random.PRNGKey(0)
    # Small NCHW input consistent with a generic tensor input to the module.
    x = jax.random.normal(key, (2, 4, 16, 16), dtype=jnp.float32)

    # Deterministic parameter init: bias = ones(1) * 0.3  (as in __init__).
    bias = jnp.ones((1,), dtype=jnp.float32) * 0.3

    a, b, ret = composed_module(x, bias)
    jax.block_until_ready((a, b, ret))

    # Reference check against plain JAX semantics of the PyTorch forward.
    a_ref = jnp.sin(x)
    b_ref = jnp.sin(a_ref)
    ret_ref = a_ref + b_ref + bias  # broadcast scalar bias
    assert jnp.allclose(a, a_ref, atol=1e-6)
    assert jnp.allclose(b, b_ref, atol=1e-6)
    assert jnp.allclose(ret, ret_ref, atol=1e-6)

    print("KERNEL_OK")
</pallas_src>

<mosaic_0001>
module attributes {stable_mosaic.version = 11 : i64} {
  func.func @composed_kernel(%arg0: i32, %arg1: memref<1xf32, #tpu.memory_space<smem>>, %arg2: memref<4x512xf32, #tpu.memory_space<vmem>>, %arg3: memref<4x512xf32, #tpu.memory_space<vmem>>, %arg4: memref<4x512xf32, #tpu.memory_space<vmem>>, %arg5: memref<4x512xf32, #tpu.memory_space<vmem>>) attributes {dimension_semantics = [#tpu.dimension_semantics<parallel>], iteration_bounds = array<i64: 1>, scalar_prefetch = 0 : i64, scratch_operands = 0 : i64, tpu.core_type = #tpu.core_type<tc>, window_params = [{transform_indices = @transform_0, window_bounds = array<i64: 1>}, {transform_indices = @transform_1, window_bounds = array<i64: 4, 512>}, {transform_indices = @transform_2, window_bounds = array<i64: 4, 512>}, {transform_indices = @transform_3, window_bounds = array<i64: 4, 512>}, {transform_indices = @transform_4, window_bounds = array<i64: 4, 512>}]} {
    %c0 = arith.constant 0 : index
    %c0_0 = arith.constant 0 : index
    %0 = vector.load %arg2[%c0, %c0_0] : memref<4x512xf32, #tpu.memory_space<vmem>>, vector<4x512xf32>
    %1 = math.sin %0 : vector<4x512xf32>
    %2 = arith.mulf %1, %1 : vector<4x512xf32>
    %cst = arith.constant 2.75573188E-6 : f32
    %3 = vector.broadcast %cst : f32 to vector<4x512xf32>
    %4 = arith.mulf %3, %2 : vector<4x512xf32>
    %cst_1 = arith.constant -1.98412701E-4 : f32
    %5 = vector.broadcast %cst_1 : f32 to vector<4x512xf32>
    %6 = arith.addf %4, %5 : vector<4x512xf32>
    %7 = arith.mulf %6, %2 : vector<4x512xf32>
    %cst_2 = arith.constant 0.00833333284 : f32
    %8 = vector.broadcast %cst_2 : f32 to vector<4x512xf32>
    %9 = arith.addf %7, %8 : vector<4x512xf32>
    %10 = arith.mulf %9, %2 : vector<4x512xf32>
    %cst_3 = arith.constant -0.166666672 : f32
    %11 = vector.broadcast %cst_3 : f32 to vector<4x512xf32>
    %12 = arith.addf %10, %11 : vector<4x512xf32>
    %13 = arith.mulf %1, %2 : vector<4x512xf32>
    %14 = arith.mulf %13, %12 : vector<4x512xf32>
    %15 = arith.addf %1, %14 : vector<4x512xf32>
    %c0_4 = arith.constant 0 : index
    %16 = memref.load %arg1[%c0_4] : memref<1xf32, #tpu.memory_space<smem>>
    %c0_5 = arith.constant 0 : index
    %c0_6 = arith.constant 0 : index
    %17 = vector.load %arg3[%c0_5, %c0_6] : memref<4x512xf32, #tpu.memory_space<vmem>>, vector<4x512xf32>
    tpu.vector_store %arg3[%c0_5, %c0_6], %1 {strides = array<i32>} : memref<4x512xf32, #tpu.memory_space<vmem>>, vector<4x512xf32>,
    %c0_7 = arith.constant 0 : index
    %c0_8 = arith.constant 0 : index
    %18 = vector.load %arg4[%c0_7, %c0_8] : memref<4x512xf32, #tpu.memory_space<vmem>>, vector<4x512xf32>
    tpu.vector_store %arg4[%c0_7, %c0_8], %15 {strides = array<i32>} : memref<4x512xf32, #tpu.memory_space<vmem>>, vector<4x512xf32>,
    %19 = arith.addf %1, %15 : vector<4x512xf32>
    %20 = vector.broadcast %16 : f32 to vector<4x512xf32>
    %21 = arith.addf %19, %20 : vector<4x512xf32>
    %c0_9 = arith.constant 0 : index
    %c0_10 = arith.constant 0 : index
    %22 = vector.load %arg5[%c0_9, %c0_10] : memref<4x512xf32, #tpu.memory_space<vmem>>, vector<4x512xf32>
    tpu.vector_store %arg5[%c0_9, %c0_10], %21 {strides = array<i32>} : memref<4x512xf32, #tpu.memory_space<vmem>>, vector<4x512xf32>,
    return
  }
  func.func @transform_0(%arg0: i32) -> i32 {
    %c0_i32 = arith.constant 0 : i32
    %c0_i32_0 = arith.constant 0 : i32
    return %c0_i32 : i32
  }
  func.func @transform_1(%arg0: i32) -> (i32, i32) {
    %c0_i32 = arith.constant 0 : i32
    %c0_i32_0 = arith.constant 0 : i32
    return %arg0, %c0_i32 : i32, i32
  }
  func.func @transform_2(%arg0: i32) -> (i32, i32) {
    %c0_i32 = arith.constant 0 : i32
    %c0_i32_0 = arith.constant 0 : i32
    return %arg0, %c0_i32 : i32, i32
  }
  func.func @transform_3(%arg0: i32) -> (i32, i32) {
    %c0_i32 = arith.constant 0 : i32
    %c0_i32_0 = arith.constant 0 : i32
    return %arg0, %c0_i32 : i32, i32
  }
  func.func @transform_4(%arg0: i32) -> (i32, i32) {
    %c0_i32 = arith.constant 0 : i32
    %c0_i32_0 = arith.constant 0 : i32
    return %arg0, %c0_i32 : i32, i32
  }
}

</mosaic_0001>

<bundles_post_ra>
// kernel: composed_module.1
= control target key start
LH: loop header
LB: loop body
LE: loop exit
PB: predicated region body
PF: predicated region fallthrough
CT: control target
= control target key end

     0   :  { %v299_v24 = vmov 683565275   ;;  %v300_v26 = vmov 2475754826   ;;  %v301_v28 = vmov 2131351028   ;;  %s427_s1 = inlined_call_operand.vmem [shape: f32[4,512], index: 1, kind: input, shape index: {}]   ;;  %s428_s2 = inlined_call_operand.vmem [shape: f32[4,512], index: 2, kind: output, shape index: {0}]   ;;  %s429_s0 = inlined_call_operand.<no memory space> [shape: f32[1], index: 0, kind: input, shape index: {}]   ;;  %s430_s3 = inlined_call_operand.vmem [shape: f32[4,512], index: 3, kind: output, shape index: {1}]   ;;  %s431_s4 = inlined_call_operand.vmem [shape: f32[4,512], index: 4, kind: output, shape index: {2}]  }
   0x1   :  { %v333_v0 = vld [vmem:[%s427_s1] sm:$0xff]  ;;  %v338_v1 = vld [vmem:[%s427_s1 + $0x8] sm:$0xff]  ;;  %v302_v30 = vmov 2102212464   ;;  %v303_v32 = vmov 920167782  }
   0x2   :  { %v17_v2 = vand.u32 2147483647, %v333_v0  ;;  %v20_v3 = vand.u32 2139095040, %v333_v0  ;;  %v121_v4 = vand.u32 2147483647, %v338_v1  ;;  %v124_v5 = vand.u32 2139095040, %v338_v1 }
   0x3   :  { %v304_v40 = vmov 1326507024   ;;  %vm19_vm14 = vcmp.lt.s32.totalorder %v333_v0, 0 }
   0x4   :  { %v21_v6 = vshrl.u32 %v20_v3, 23  ;;  %v24_v7 = vand.u32 8388607, %v17_v2  ;;  %v125_v8 = vshrl.u32 %v124_v5, 23  ;;  %v128_v9 = vand.u32 8388607, %v121_v4 }
   0x5   :  { %vm18_vm15 = vcmp.le.f32.partialorder %v17_v2, 0.7853982 }
   0x6   :  { %v269_v10 = vadd.s32 4294967169, %v21_v6  ;;  %v273_v11 = vadd.s32 4294967169, %v125_v8  ;;  %v25_v13 = vor.u32 8388608, %v24_v7  ;;  %v129_v14 = vor.u32 8388608, %v128_v9 }
   0x8   :  { %v27_v12 = vadd.s32 1, %v269_v10  ;;  %v131_v15 = vadd.s32 1, %v273_v11  ;;  %v348_v20 = vshll.u32 %v25_v13, 8  ;;  %v350_v22 = vshll.u32 %v129_v14, 8 }
   0xa   :  { %vm28_vm0 = vcmp.gt.s32.totalorder %v27_v12, 0  ;;  %vm132_vm1 = vcmp.gt.s32.totalorder %v131_v15, 0 }
   0xb   :  { %v29_v16 = vsel %vm28_vm0, %v27_v12, 0  ;;  %v133_v19 = vsel %vm132_vm1, %v131_v15, 0  ;;  %vm123_vm0 = vcmp.lt.s32.totalorder %v338_v1, 0  ;;  %vm122_vm1 = vcmp.le.f32.partialorder %v121_v4, 0.7853982 }
   0xc   :  { %v30_v17 = vshrl.u32 %v29_v16, 5  ;;  %v31_v18 = vand.u32 31, %v29_v16  ;;  %v135_v21 = vand.u32 31, %v133_v19  ;;  %v352_v34 = vshrl.u32 %v133_v19, 5 }
   0xe   :  { %v32_v23 = vsub.s32 32, %v31_v18  ;;  %v34_v25 = vshll.u32 %v299_v24, %v31_v18  ;;  %v37_v27 = vshll.u32 %v300_v26, %v31_v18  ;;  %v40_v29 = vshll.u32 %v301_v28, %v31_v18 }
   0xf   :  { %v43_v31 = vshll.u32 %v302_v30, %v31_v18  ;;  %v46_v33 = vshll.u32 %v303_v32, %v31_v18  ;;  %vm49_vm2 = vcmp.lt.s32.totalorder %v30_v17, 1  ;;  %vm50_vm3 = vcmp.lt.s32.totalorder %v30_v17, 2 }
  0x10   :  { %v33_v35 = vshrl.u32 %v299_v24, %v32_v23  ;;  %v35_v36 = vshrl.u32 %v300_v26, %v32_v23  ;;  %v38_v37 = vshrl.u32 %v301_v28, %v32_v23  ;;  %v41_v38 = vshrl.u32 %v302_v30, %v32_v23 }
  0x11   :  { %v44_v39 = vshrl.u32 %v303_v32, %v32_v23  ;;  %v47_v41 = vshrl.u32 %v304_v40, %v32_v23  ;;  %vm52_vm4 = vcmp.lt.s32.totalorder %v30_v17, 4  ;;  %v136_v45 = vsub.s32 32, %v135_v21 }
  0x12   :  { %v36_v42 = vor.u32 %v35_v36, %v34_v25  ;;  %v39_v43 = vor.u32 %v38_v37, %v37_v27  ;;  %v42_v44 = vor.u32 %v41_v38, %v40_v29  ;;  %vm51_vm5 = vcmp.lt.s32.totalorder %v30_v17, 3 }
  0x13   :  { %v45_v46 = vor.u32 %v44_v39, %v43_v31  ;;  %v48_v47 = vor.u32 %v47_v41, %v46_v33  ;;  %v138_v48 = vshll.u32 %v299_v24, %v135_v21  ;;  %v141_v56 = vshll.u32 %v300_v26, %v135_v21 }
  0x14   :  { %v53_v49 = vsel %vm49_vm2, %v33_v35, %v36_v42  ;;  %v54_v50 = vsel %vm52_vm4, %v42_v44, 2102212464  ;;  %v57_v51 = vsel %vm49_vm2, %v36_v42, %v39_v43  ;;  %v61_v52 = vsel %vm49_vm2, %v39_v43, %v42_v44 }
  0x15   :  { %v55_v53 = vsel %vm51_vm5, %v39_v43, %v54_v50  ;;  %v58_v54 = vsel %vm52_vm4, %v45_v46, 920167782  ;;  %v62_v55 = vsel %vm52_vm4, %v48_v47, 1326507024  ;;  %v137_v59 = vshrl.u32 %v299_v24, %v136_v45 }
  0x16   :  { %v59_v57 = vsel %vm51_vm5, %v42_v44, %v58_v54  ;;  %v63_v58 = vsel %vm51_vm5, %v45_v46, %v62_v55  ;;  %v139_v60 = vshrl.u32 %v300_v26, %v136_v45  ;;  %v56_v61 = vsel %vm50_vm3, %v53_v49, %v55_v53 }
  0x17   :  { %v60_v62 = vsel %vm50_vm3, %v57_v51, %v59_v57  ;;  %v64_v63 = vsel %vm50_vm3, %v61_v52, %v63_v58  ;;  %v142_v3 = vshrl.u32 %v301_v28, %v136_v45  ;;  %v144_v11 = vshll.u32 %v301_v28, %v135_v21 }
  0x18   :  { %v361_v5 = vmul.u32.u64.low %v348_v20, %v64_v63  ;;  %v362_v6 = vmul.u32.u64.high %v348_v20, %v64_v63, %v361_v5  ;;  %v365_v7 = vmul.u32.u64.low %v348_v20, %v60_v62  ;;  %v366_v8 = vmul.u32.u64.high %v348_v20, %v60_v62, %v365_v7 }
  0x19   :  { %v140_v9 = vor.u32 %v139_v60, %v138_v48  ;;  %v143_v10 = vor.u32 %v142_v3, %v141_v56  ;;  %v145_v12 = vshrl.u32 %v302_v30, %v136_v45  ;;  %v147_v13 = vshll.u32 %v302_v30, %v135_v21 }
  0x1a   :  { %v148_v14 = vshrl.u32 %v303_v32, %v136_v45  ;;  %v150_v15 = vshll.u32 %v303_v32, %v135_v21  ;;  %v151_v16 = vshrl.u32 %v304_v40, %v136_v45  ;;  %v72_v17 = vmul.u32 %v348_v20, %v56_v61 }
  0x1b   :  { %v146_v18 = vor.u32 %v145_v12, %v144_v11  ;;  %vm153_vm6 = vcmp.lt.s32.totalorder %v352_v34, 1  ;;  %vm154_vm7 = vcmp.lt.s32.totalorder %v352_v34, 2  ;;  %vm74_vm8 = vc.u32 %v362_v6, %v365_v7 }
  0x1c   :  { %v75_v19 = vadd.s32 1, %v366_v8  ;;  %v149_v23 = vor.u32 %v148_v14, %v147_v13  ;;  %vm155_vm9 = vcmp.lt.s32.totalorder %v352_v34, 3  ;;  %v152_v24 = vor.u32 %v151_v16, %v150_v15 }
  0x1d   :  { %vm156_vm10 = vcmp.lt.s32.totalorder %v352_v34, 4  ;;  %v157_v25 = vsel %vm153_vm6, %v137_v59, %v140_v9  ;;  %v161_v21 = vsel %vm153_vm6, %v140_v9, %v143_v10  ;;  %v165_v28 = vsel %vm153_vm6, %v143_v10, %v146_v18 }
  0x1e   :  { %v76_v26 = vsel %vm74_vm8, %v75_v19, %v366_v8  ;;  %v158_v20 = vsel %vm156_vm10, %v146_v18, 2102212464  ;;  %v162_v27 = vsel %vm156_vm10, %v149_v23, 920167782  ;;  %v166_v32 = vsel %vm156_vm10, %v152_v24, 1326507024 }
  0x1f   :  { %v77_v29 = vadd.s32 %v76_v26, %v72_v17  ;;  %v159_v30 = vsel %vm155_vm9, %v143_v10, %v158_v20  ;;  %v163_v31 = vsel %vm155_vm9, %v146_v18, %v162_v27  ;;  %v167_v36 = vsel %vm155_vm9, %v149_v23, %v166_v32 }
  0x20   :  { %v160_v33 = vsel %vm154_vm7, %v157_v25, %v159_v30  ;;  %v164_v35 = vsel %vm154_vm7, %v161_v21, %v163_v31  ;;  %v168_v38 = vsel %vm154_vm7, %v165_v28, %v167_v36  ;;  %v73_v57 = vadd.s32 %v365_v7, %v362_v6 }
  0x21   :  { %v78_v37 = vadd.s32 536870912, %v77_v29  ;;  %v383_v39 = vmul.u32.u64.low %v350_v22, %v164_v35  ;;  %v384_v40 = vmul.u32.u64.high %v350_v22, %v164_v35, %v383_v39  ;;  %v176_v44 = vmul.u32 %v350_v22, %v160_v33 }
  0x22   :  { %v387_v41 = vmul.u32.u64.low %v350_v22, %v168_v38  ;;  %v388_v42 = vmul.u32.u64.high %v350_v22, %v168_v38, %v387_v41  ;;  %vm109_vm5 = vweird.f32 %v333_v0  ;;  %vm213_vm9 = vweird.f32 %v338_v1 }
  0x23   :  { %v79_v43 = vshrl.u32 %v78_v37, 30  ;;  %v179_v46 = vadd.s32 1, %v384_v40 }
  0x24   :  { %vm178_vm11 = vc.u32 %v388_v42, %v383_v39  ;;  %v177_v13 = vadd.s32 %v383_v39, %v388_v42 }
  0x25   :  { %v80_v45 = vshll.u32 %v79_v43, 30  ;;  %v180_v34 = vsel %vm178_vm11, %v179_v46, %v384_v40  ;;  %v103_v6 = vsub.s32 4, %v79_v43 }
  0x26   :  { %v181_v48 = vadd.s32 %v180_v34, %v176_v44 }
  0x27   :  { %v81_v47 = vsub.s32 %v77_v29, %v80_v45  ;;  %v104_v25 = vsel %vm19_vm14, %v103_v6, %v79_v43 }
  0x28   :  { %v182_v50 = vadd.s32 536870912, %v181_v48  ;;  %v106_v28 = vsel %vm18_vm15, 0, %v104_v25 }
  0x29   :  { %v83_v49 = vsub.s32 0, %v81_v47  ;;  %v110_v33 = vadd.s32 3, %v106_v28 }
  0x2a   :  { %v183_v52 = vshrl.u32 %v182_v50, 30 }
  0x2b   :  { %v270_v51 = vmin.u32 %v83_v49, %v81_v47  ;;  %v111_v37 = vand.u32 3, %v110_v33 }
  0x2c   :  { %v184_v54 = vshll.u32 %v183_v52, 30  ;;  %v207_v32 = vsub.s32 4, %v183_v52 }
  0x2d   :  { %v85_v53 = vclz %v270_v51  ;;  %vm116_vm2 = vcmp.eq.s32.totalorder %v111_v37, 2  ;;  %vm113_vm3 = vcmp.eq.s32.totalorder %v111_v37, 0  ;;  %vm112_vm4 = vcmp.lt.s32.totalorder %v111_v37, 2 }
  0x2e   :  { %v185_v56 = vsub.s32 %v181_v48, %v184_v54  ;;  %v208_v36 = vsel %vm123_vm0, %v207_v32, %v183_v52 }
  0x2f   :  { %v271_v55 = vadd.s32 4294967294, %v85_v53  ;;  %v210_v40 = vsel %vm122_vm1, 0, %v208_v36 }
  0x30   :  { %v187_v58 = vsub.s32 0, %v185_v56  ;;  %v214_v44 = vadd.s32 3, %v210_v40 }
  0x31   :  { %vm272_vm12 = vcmp.lt.s32.totalorder %v271_v55, 0 }
  0x32   :  { %v88_v22 = vsel %vm272_vm12, 0, %v271_v55  ;;  %v274_v62 = vmin.u32 %v187_v58, %v185_v56  ;;  %v215_v34 = vand.u32 3, %v214_v44 }
  0x33   :  { %v89_v59 = vsub.s32 32, %v88_v22  ;;  %v90_v60 = vshll.u32 %v81_v47, %v88_v22  ;;  %v93_v61 = vsub.s32 4294967266, %v88_v22 }
  0x34   :  { %v189_v5 = vclz %v274_v62  ;;  %vm220_vm6 = vcmp.eq.s32.totalorder %v215_v34, 2  ;;  %vm217_vm7 = vcmp.eq.s32.totalorder %v215_v34, 0  ;;  %vm216_vm8 = vcmp.lt.s32.totalorder %v215_v34, 2 }
  0x35   :  { %v91_v63 = vshrl.u32 %v73_v57, %v89_v59  ;;  %v94_v3 = vadd.s32 127, %v93_v61 }
  0x36   :  { %v275_v10 = vadd.s32 4294967294, %v189_v5 }
  0x37   :  { %v92_v8 = vor.u32 %v91_v63, %v90_v60  ;;  %v95_v9 = vshll.u32 %v94_v3, 23 }
  0x38   :  { %vm276_vm13 = vcmp.lt.s32.totalorder %v275_v10, 0 }
  0x39   :  { %v96_v11 = vor.u32 4788187, %v95_v9  ;;  %v99_v12 = vcvt.s32.f32 %v92_v8  ;;  %v192_v7 = vsel %vm276_vm13, 0, %v275_v10 }
  0x3a   :  { %v193_v15 = vsub.s32 32, %v192_v7  ;;  %v194_v16 = vshll.u32 %v185_v56, %v192_v7  ;;  %v197_v17 = vsub.s32 4294967266, %v192_v7 }
  0x3b   :  { %v97_v14 = vand.u32 2147483647, %v96_v11  ;;  %v252_v11 = vstv %s429_s0 }
  0x3c   :  { %v195_v19 = vshrl.u32 %v177_v13, %v193_v15  ;;  %v198_v23 = vadd.s32 127, %v197_v17 }
  0x3d   :  { %v100_v18 = vmul.f32 %v99_v12, %v97_v14 }
  0x3e   :  { %v196_v21 = vor.u32 %v195_v19, %v194_v16  ;;  %v199_v26 = vshll.u32 %v198_v23, 23 }
  0x3f   :  { %v101_v24 = vxor.u32 2147483648, %v100_v18 }
  0x40   :  { %v200_v29 = vor.u32 4788187, %v199_v26  ;;  %v203_v30 = vcvt.s32.f32 %v196_v21 }
  0x41   :  { %v102_v20 = vsel %vm19_vm14, %v101_v24, %v100_v18 }
  0x42   :  { %v105_v27 = vsel %vm18_vm15, %v333_v0, %v102_v20  ;;  %v201_v31 = vand.u32 2147483647, %v200_v29 }
  0x43   :  { %291 = vcosq.f32 %v105_v27 }
  0x44   :  { %293 = vsinq.f32 %v105_v27  ;;  %v204_v35 = vmul.f32 %v203_v30, %v201_v31 }
  0x46   :  { %v205_v2 = vxor.u32 2147483648, %v204_v35 }
  0x48   :  { %v206_v38 = vsel %vm123_vm0, %v205_v2, %v204_v35 }
  0x49   :  { %v209_v39 = vsel %vm122_vm1, %v338_v1, %v206_v38 }
  0x4a   :  { %295 = vcosq.f32 %v209_v39 }
  0x4b   :  { %297 = vsinq.f32 %v209_v39 }
  0x4d   :  { %v292_v41 = vpop.eup %291 }
  0x4e   :  { %v294_v42 = vpop.eup %293  ;;  %v117_v43 = vxor.u32 2147483648, %v292_v41 }
  0x4f   :  { %v114_v45 = vxor.u32 2147483648, %v294_v42 }
  0x50   :  { %v118_v4 = vsel %vm116_vm2, %v117_v43, %v294_v42 }
  0x51   :  { %v115_v46 = vsel %vm113_vm3, %v292_v41, %v114_v45 }
  0x52   :  { %v119_v47 = vsel %vm112_vm4, %v115_v46, %v118_v4 }
  0x53   :  { %v120_v48 = vsel %vm109_vm5, nan, %v119_v47 }
  0x54   :  { %v225_v49 = vmul.f32 %v120_v48, %v120_v48  ;;  %246 = vst [vmem:[%s428_s2] sm:$0xff] %v120_v48  ;;  %v296_v50 = vpop.eup %295 }
  0x55   :  { %v298_v52 = vpop.eup %297  ;;  %v221_v53 = vxor.u32 2147483648, %v296_v50 }
  0x56   :  { %v227_v51 = vmul.f32 2.7557319e-06, %v225_v49  ;;  %v218_v54 = vxor.u32 2147483648, %v298_v52  ;;  %v239_v62 = vmul.f32 %v225_v49, %v120_v48 }
  0x57   :  { %v222_v0 = vsel %vm220_vm6, %v221_v53, %v298_v52 }
  0x58   :  { %v229_v55 = vadd.f32 -0.0001984127, %v227_v51  ;;  %v219_v56 = vsel %vm217_vm7, %v296_v50, %v218_v54 }
  0x59   :  { %v223_v22 = vsel %vm216_vm8, %v219_v56, %v222_v0 }
  0x5a   :  { %v231_v57 = vmul.f32 %v229_v55, %v225_v49  ;;  %v224_v58 = vsel %vm213_vm9, nan, %v223_v22 }
  0x5b   :  { %v226_v60 = vmul.f32 %v224_v58, %v224_v58  ;;  %247 = vst [vmem:[%s428_s2 + $0x8] sm:$0xff] %v224_v58 }
  0x5c   :  { %v233_v59 = vadd.f32 0.008333333, %v231_v57 }
  0x5d   :  { %v228_v63 = vmul.f32 2.7557319e-06, %v226_v60  ;;  %v240_v14 = vmul.f32 %v226_v60, %v224_v58 }
  0x5e   :  { %v235_v61 = vmul.f32 %v233_v59, %v225_v49 }
  0x5f   :  { %v230_v5 = vadd.f32 -0.0001984127, %v228_v63 }
  0x60   :  { %v237_v3 = vadd.f32 -0.16666667, %v235_v61 }
  0x61   :  { %v232_v9 = vmul.f32 %v230_v5, %v226_v60 }
  0x62   :  { %v241_v8 = vmul.f32 %v239_v62, %v237_v3 }
  0x63   :  { %v234_v1 = vadd.f32 0.008333333, %v232_v9 }
  0x64   :  { %v243_v10 = vadd.f32 %v241_v8, %v120_v48 }
  0x65   :  { %v236_v13 = vmul.f32 %v234_v1, %v226_v60 }
  0x66   :  { %248 = vst [vmem:[%s430_s3] sm:$0xff] %v243_v10  ;;  %v250_v12 = vadd.f32 %v243_v10, %v120_v48 }
  0x67   :  { %v238_v7 = vadd.f32 -0.16666667, %v236_v13 }
  0x68   :  { %v253_v6 = vadd.f32 %v252_v11, %v250_v12 }
  0x69   :  { %v242_v15 = vmul.f32 %v240_v14, %v238_v7 }
  0x6a   :  { %255 = vst [vmem:[%s431_s4] sm:$0xff] %v253_v6 }
  0x6b   :  { %v244_v16 = vadd.f32 %v242_v15, %v224_v58 }
  0x6d   :  { %249 = vst [vmem:[%s430_s3 + $0x8] sm:$0xff] %v244_v16  ;;  %v251_v17 = vadd.f32 %v244_v16, %v224_v58 }
  0x6f   :  { %v254_v18 = vadd.f32 %v252_v11, %v251_v17 }
  0x71   :  { %256 = vst [vmem:[%s431_s4 + $0x8] sm:$0xff] %v254_v18 }

</bundles_post_ra>
